<compile_context>
chip_gen: v7x
topology: tpu7x:2x2x1
jax: 0.10.0
libtpu: 0.0.40
codegen_flags: <defaults>
</compile_context>

<pallas_src>
import functools

import jax
import jax.numpy as jnp
from jax import lax
from jax.experimental import pallas as pl
from jax.experimental.pallas import tpu as pltpu


def _mocov3_loss_kernel(q_ref, k_ref, out_ref, *, temperature, scale,
                        block_rows, n_real, n_pad):
    """One query-row block.

    q_ref  : [tm, C]     query rows (view 0), block i, original dtype
    k_ref  : [N_pad, C]  all key rows (view 1), pre-normalized bf16, resident
    out_ref: [1, 1]      SMEM partial loss sum for this block (pre-scaled)
    """
    q = q_ref[...].astype(jnp.float32)

    # torch F.normalize(dim=1, eps=1e-12): x / max(||x||, eps)
    #   == x * rsqrt(max(||x||^2, eps^2))   (EUP rsqrt, no sqrt+divide)
    eps_sq = jnp.float32(1e-24)
    q_n = q * lax.rsqrt(jnp.maximum(jnp.sum(q * q, axis=1, keepdims=True), eps_sq))

    inv_t = jnp.float32(1.0 / temperature)

    # [tm, N_pad] logits on the MXU with bf16 operands / f32 accumulation.
    # Keys are already normalized + bf16; contract feature dim of both
    # operands directly (no transpose of the key tile).
    k_bf = k_ref[...]
    logits = lax.dot_general(
        q_n.astype(jnp.bfloat16), k_bf, (((1,), (1,)), ((), ())),
        preferred_element_type=jnp.float32) * inv_t

    # Diagonal logits straight from the resident key block: O(tm*C), no extra
    # input stream and no NxN masks.
    row0 = pl.multiple_of(pl.program_id(0) * block_rows, block_rows)
    kd = k_ref[pl.ds(row0, block_rows), :].astype(jnp.float32)
    diag = jnp.sum(q_n * kd, axis=1, keepdims=True) * inv_t            # [tm, 1]

    # Mask padded key columns (static no-op when N is already a tile multiple).
    if n_real != n_pad:
        col = lax.broadcasted_iota(jnp.int32, logits.shape, 1)
        logits = jnp.where(col < n_real, logits, jnp.float32(-1e30))

    # Cross entropy vs labels = arange: loss_i = logsumexp(logits_i) - diag_i.
    if temperature >= 0.05:
        # |logits| <= ~1/T after L2 normalization, so a constant shift is a
        # valid logsumexp stabilizer and saves the per-row XLU max reduce.
        shift = inv_t
        lse = jnp.log(jnp.sum(jnp.exp(logits - shift), axis=1, keepdims=True)) + shift
    else:
        m = jnp.max(logits, axis=1, keepdims=True)
        lse = jnp.log(jnp.sum(jnp.exp(logits - m), axis=1, keepdims=True)) + m

    per_row = lse - diag                                               # [tm, 1]
    # Mask padded query rows out of the partial sum.
    if n_real != n_pad:
        rows = (pl.program_id(0) * block_rows
                + lax.broadcasted_iota(jnp.int32, per_row.shape, 0))
        per_row = jnp.where(rows < n_real, per_row, jnp.float32(0.0))

    # Pre-scaled partial sum (scale = 2*T / N); wrapper sums across blocks.
    out_ref[0, 0] = jnp.sum(per_row) * jnp.float32(scale)


def _round_up(x, m):
    return ((x + m - 1) // m) * m


def _pick_block_rows(n):
    """MXU-friendly row tile; awkward N is handled by padding + masking,
    never by a monolithic [N, N] tile or tiny 8/16-row blocks."""
    if n >= 256 and n % 256 == 0:
        return 256
    if n >= 128:
        return 128
    return _round_up(max(n, 1), 8)   # small batch: single padded block


def _vmem_limit_bytes():
    """~20% headroom below physical VMEM (64 MiB v7x, 128 MiB v5e/v6e)."""
    try:
        cap = int(pltpu.get_tpu_info().vmem_capacity_bytes)
    except Exception:
        cap = 64 * 1024 * 1024
    return int(cap * 4 // 5)


def mocov3_loss(cl_features, temperature=0.1):
    """JAX/Pallas equivalent of MOCOV3Loss.forward.

    cl_features: [bsz, n_views, ...] (>= 3 dims). Returns scalar f32 loss.
    """
    if cl_features.ndim < 3:
        raise ValueError("`features` needs to be [bsz, n_views, ...], "
                         "at least 3 dimensions are required")
    if cl_features.ndim > 3:
        cl_features = cl_features.reshape(
            cl_features.shape[0], cl_features.shape[1], -1)

    f1 = cl_features[:, 0]                       # [N, C] queries (view 0)
    f2 = cl_features[:, 1]                       # [N, C] keys    (view 1)
    n, c = f1.shape

    # Normalize keys ONCE (f32, wrapper side -> XLA fuses), then bf16 for the
    # resident VMEM block (half the bytes, bf16-native MXU operand).
    k = f2.astype(jnp.float32)
    k = k * lax.rsqrt(jnp.maximum(jnp.sum(k * k, axis=1, keepdims=True),
                                  jnp.float32(1e-24)))
    k = k.astype(jnp.bfloat16)

    tm = _pick_block_rows(n)
    n_pad = _round_up(n, tm)
    if n_pad != n:
        pad = n_pad - n
        f1 = jnp.pad(f1, ((0, pad), (0, 0)))
        k = jnp.pad(k, ((0, pad), (0, 0)))
    num_blocks = n_pad // tm
    scale = 2.0 * float(temperature) / float(n)

    kernel = functools.partial(
        _mocov3_loss_kernel, temperature=float(temperature), scale=scale,
        block_rows=tm, n_real=n, n_pad=n_pad)

    partials = pl.pallas_call(
        kernel,
        out_shape=jax.ShapeDtypeStruct((num_blocks, 1), jnp.float32),
        grid_spec=pltpu.PrefetchScalarGridSpec(
            num_scalar_prefetch=0,
            grid=(num_blocks,),
            in_specs=[
                pl.BlockSpec((tm, c), lambda i: (i, 0)),      # query row block
                pl.BlockSpec((n_pad, c), lambda i: (0, 0)),   # resident key set
            ],
            out_specs=pl.BlockSpec((1, 1), lambda i: (i, 0),
                                   memory_space=pltpu.MemorySpace.SMEM),
        ),
        compiler_params=pltpu.CompilerParams(
            dimension_semantics=("parallel",),   # megacore splits row blocks
            vmem_limit_bytes=_vmem_limit_bytes(),
        ),
    )(f1, k)

    return jnp.sum(partials)


def _reference_loss(cl_features, temperature=0.1):
    """Pure-JAX reference mirroring the PyTorch module."""
    if cl_features.ndim > 3:
        cl_features = cl_features.reshape(
            cl_features.shape[0], cl_features.shape[1], -1)
    f1 = cl_features[:, 0].astype(jnp.float32)
    f2 = cl_features[:, 1].astype(jnp.float32)
    f1 = f1 / jnp.maximum(jnp.linalg.norm(f1, axis=1, keepdims=True), 1e-12)
    f2 = f2 / jnp.maximum(jnp.linalg.norm(f2, axis=1, keepdims=True), 1e-12)
    logits = (f1 @ f2.T) / temperature
    n = logits.shape[0]
    lse = jax.nn.logsumexp(logits, axis=1)
    diag = logits[jnp.arange(n), jnp.arange(n)]
    return jnp.mean(lse - diag) * (2.0 * temperature)


if __name__ == "__main__":
    key = jax.random.PRNGKey(0)
    # [bsz=8, n_views=2, feat_dim=32]
    cl_features = jax.random.normal(key, (8, 2, 32), dtype=jnp.float32)

    loss = jax.block_until_ready(mocov3_loss(cl_features, temperature=0.1))
    ref = _reference_loss(cl_features, temperature=0.1)
    # bf16 MXU operands -> loosen tolerance vs the f32 reference.
    assert jnp.allclose(loss, ref, atol=1e-2, rtol=1e-2), (loss, ref)

    # Awkward batch size exercises the pad + mask path.
    cl2 = jax.random.normal(jax.random.PRNGKey(1), (6, 2, 32), dtype=jnp.float32)
    loss2 = jax.block_until_ready(mocov3_loss(cl2, temperature=0.1))
    ref2 = _reference_loss(cl2, temperature=0.1)
    assert jnp.allclose(loss2, ref2, atol=1e-2, rtol=1e-2), (loss2, ref2)

    print("KERNEL_OK")
</pallas_src>

<mosaic_0001>
module attributes {stable_mosaic.version = 11 : i64} {
  func.func @_mocov3_loss_kernel(%arg0: i32, %arg1: memref<8x32xf32, #tpu.memory_space<vmem>>, %arg2: memref<8x32xbf16, #tpu.memory_space<vmem>>, %arg3: memref<1x1xf32, #tpu.memory_space<smem>>) attributes {dimension_semantics = [#tpu.dimension_semantics<parallel>], iteration_bounds = array<i64: 1>, scalar_prefetch = 0 : i64, scratch_operands = 0 : i64, tpu.core_type = #tpu.core_type<tc>, window_params = [{transform_indices = @transform_0, window_bounds = array<i64: 8, 32>}, {pipeline_mode = #tpu.pipeline_mode<synchronous>, transform_indices = @transform_1, window_bounds = array<i64: 8, 32>}, {transform_indices = @transform_2, window_bounds = array<i64: 1, 1>}]} {
    %c0 = arith.constant 0 : index
    %c0_0 = arith.constant 0 : index
    %0 = vector.load %arg1[%c0, %c0_0] : memref<8x32xf32, #tpu.memory_space<vmem>>, vector<8x32xf32>
    %1 = arith.mulf %0, %0 : vector<8x32xf32>
    %cst = arith.constant dense<0.000000e+00> : vector<8xf32>
    %2 = vector.multi_reduction <add>, %1, %cst [1] : vector<8x32xf32> to vector<8xf32>
    %3 = vector.shape_cast %2 : vector<8xf32> to vector<8x1xf32>
    %cst_1 = arith.constant 1.000000e-24 : f32
    %4 = vector.broadcast %cst_1 : f32 to vector<8x1xf32>
    %5 = arith.maximumf %3, %4 : vector<8x1xf32>
    %6 = math.rsqrt %5 : vector<8x1xf32>
    %7 = vector.broadcast %6 : vector<8x1xf32> to vector<8x32xf32>
    %8 = arith.mulf %0, %7 : vector<8x32xf32>
    %c0_2 = arith.constant 0 : index
    %c0_3 = arith.constant 0 : index
    %9 = vector.load %arg2[%c0_2, %c0_3] : memref<8x32xbf16, #tpu.memory_space<vmem>>, vector<8x32xbf16>
    %10 = arith.truncf %8 : vector<8x32xf32> to vector<8x32xbf16>
    %cst_4 = arith.constant dense<0.000000e+00> : vector<8x8xf32>
    %11 = tpu.matmul %10, %9, %cst_4 {dimension_numbers = #tpu.dot_dimension_numbers<[1], [1], [0], [0], [0, 0, 1, 0], [], []>} : vector<8x32xbf16>, vector<8x32xbf16>, vector<8x8xf32> -> vector<8x8xf32>
    %cst_5 = arith.constant 1.000000e+01 : f32
    %12 = vector.broadcast %cst_5 : f32 to vector<8x8xf32>
    %13 = arith.mulf %11, %12 : vector<8x8xf32>
    %c8_i32 = arith.constant 8 : i32
    %14 = arith.muli %arg0, %c8_i32 : i32
    %15 = tpu.assume_multiple %14, 8 : i32
    %16 = arith.index_cast %15 : i32 to index
    %c0_6 = arith.constant 0 : index
    %17 = vector.load %arg2[%16, %c0_6] : memref<8x32xbf16, #tpu.memory_space<vmem>>, vector<8x32xbf16>
    %18 = arith.extf %17 : vector<8x32xbf16> to vector<8x32xf32>
    %19 = arith.mulf %8, %18 : vector<8x32xf32>
    %cst_7 = arith.constant dense<0.000000e+00> : vector<8xf32>
    %20 = vector.multi_reduction <add>, %19, %cst_7 [1] : vector<8x32xf32> to vector<8xf32>
    %21 = vector.shape_cast %20 : vector<8xf32> to vector<8x1xf32>
    %cst_8 = arith.constant 1.000000e+01 : f32
    %22 = vector.broadcast %cst_8 : f32 to vector<8x1xf32>
    %23 = arith.mulf %21, %22 : vector<8x1xf32>
    %cst_9 = arith.constant 1.000000e+01 : f32
    %24 = vector.broadcast %cst_9 : f32 to vector<8x8xf32>
    %25 = arith.subf %13, %24 : vector<8x8xf32>
    %26 = math.exp %25 : vector<8x8xf32>
    %cst_10 = arith.constant dense<0.000000e+00> : vector<8xf32>
    %27 = vector.multi_reduction <add>, %26, %cst_10 [1] : vector<8x8xf32> to vector<8xf32>
    %28 = vector.shape_cast %27 : vector<8xf32> to vector<8x1xf32>
    %29 = math.log %28 : vector<8x1xf32>
    %cst_11 = arith.constant 1.000000e+01 : f32
    %30 = vector.broadcast %cst_11 : f32 to vector<8x1xf32>
    %31 = arith.addf %29, %30 : vector<8x1xf32>
    %32 = arith.subf %31, %23 : vector<8x1xf32>
    %33 = vector.shape_cast %32 : vector<8x1xf32> to vector<1x8x1xf32>
    %cst_12 = arith.constant dense<0.000000e+00> : vector<1xf32>
    %34 = vector.multi_reduction <add>, %33, %cst_12 [1, 2] : vector<1x8x1xf32> to vector<1xf32>
    %35 = vector.shape_cast %34 : vector<1xf32> to vector<1x1x1xf32>
    %36 = vector.extract %35[0, 0, 0] : f32 from vector<1x1x1xf32>
    %cst_13 = arith.constant 2.500000e-02 : f32
    %37 = arith.mulf %36, %cst_13 : f32
    %c0_14 = arith.constant 0 : index
    %c0_15 = arith.constant 0 : index
    %38 = memref.load %arg3[%c0_14, %c0_15] : memref<1x1xf32, #tpu.memory_space<smem>>
    memref.store %37, %arg3[%c0_14, %c0_15] : memref<1x1xf32, #tpu.memory_space<smem>>
    return
  }
  func.func @transform_0(%arg0: i32) -> (i32, i32) {
    %c0_i32 = arith.constant 0 : i32
    %c0_i32_0 = arith.constant 0 : i32
    return %arg0, %c0_i32 : i32, i32
  }
  func.func @transform_1(%arg0: i32) -> (i32, i32) {
    %c0_i32 = arith.constant 0 : i32
    %c0_i32_0 = arith.constant 0 : i32
    %c0_i32_1 = arith.constant 0 : i32
    return %c0_i32, %c0_i32_0 : i32, i32
  }
  func.func @transform_2(%arg0: i32) -> (i32, i32) {
    %c0_i32 = arith.constant 0 : i32
    %c0_i32_0 = arith.constant 0 : i32
    return %arg0, %c0_i32 : i32, i32
  }
}

</mosaic_0001>

<bundles_post_ra>
// kernel: tpu_custom_call.1
= control target key start
LH: loop header
LB: loop body
LE: loop exit
PB: predicated region body
PF: predicated region fallthrough
CT: control target
= control target key end

     0   :  { %7 = vsyncpa [#allocation3], 0  ;;  %s292_s0 = inlined_call_operand.hbm [shape: f32[8,32], index: 0, kind: input, shape index: {}]   ;;  %s293_s1 = inlined_call_operand.hbm [shape: bf16[8,32], index: 1, kind: input, shape index: {}]   ;;  %s294_s2 = inlined_call_operand.hbm [shape: f32[1,1], index: 2, kind: output, shape index: {}]  }
   0x1   :  { %8 = vsyncpa [#allocation6], 0 }
   0x2   :  { %9 = vsyncpa [#allocation4], 0  ;;  %s232_s9 = smov [#allocation2]   ;;  %s233_s11 = smov [#allocation5]  }
   0x3   :  { %s16_s10 = sshll.u32 %s232_s9, 4  ;;  %s26_s12 = sshll.u32 %s233_s11, 4  ;;  %s17_s10 = int_to_ptr.vmem [resolvable:$true] %s16_s10  ;;  %s27_s12 = int_to_ptr.vmem [resolvable:$true] %s26_s12 }
   0x4   :  { %s172_s15 = scalar_lea.hbm %s292_s0, 128 }
   0x5   :  { %p173_p0 = scmp.ne.s32.totalorder %s292_s0, %s172_s15  ;;  %p176_p1 = scmp.lt.u32.totalorder %s172_s15, %s292_s0 }
   0x7   :  { %p178_p2 = pnand %p176_p1, %p173_p0 }
   0x9   :  { %181 = shalt.err (!%p178_p2)
}
   0xa   :  { %s182_s20 = scalar_lea.vmem %s17_s10, 128  ;;  %p187_p4 = scmp.lt.s32.totalorder %s17_s10, %s17_s10 }
   0xb   :  { %p183_p3 = scmp.ne.s32.totalorder %s17_s10, %s182_s20  ;;  %p188_p5 = scmp.lt.s32.totalorder %s182_s20, %s182_s20 }
   0xd   :  { %p189_p6 = por %p188_p5, %p187_p4 }
   0xf   :  { %p190_p7 = pnand %p189_p6, %p183_p3 }
  0x11   :  { %193 = shalt.err (!%p190_p7)
}
  0x12   :  { %19 = dma.hbm_to_vmem [thread:$0]  %s292_s0, 128, %s17_s10, [#allocation3]  }
  0x13   :  { %s194_s25 = scalar_lea.hbm %s293_s1, 64 }
  0x14   :  { %p195_p8 = scmp.ne.s32.totalorder %s293_s1, %s194_s25  ;;  %p198_p9 = scmp.lt.u32.totalorder %s194_s25, %s293_s1 }
  0x16   :  { %p200_p10 = pnand %p198_p9, %p195_p8 }
  0x18   :  { %203 = shalt.err (!%p200_p10)
}
  0x19   :  { %s204_s30 = scalar_lea.vmem %s27_s12, 64  ;;  %p209_p12 = scmp.lt.s32.totalorder %s27_s12, %s27_s12 }
  0x1a   :  { %p205_p11 = scmp.ne.s32.totalorder %s27_s12, %s204_s30  ;;  %p210_p13 = scmp.lt.s32.totalorder %s204_s30, %s204_s30 }
  0x1c   :  { %p211_p0 = por %p210_p13, %p209_p12 }
  0x1e   :  { %p212_p1 = pnand %p211_p0, %p205_p11 }
  0x20   :  { %215 = shalt.err (!%p212_p1)
}
  0x21   :  { %29 = dma.hbm_to_vmem [thread:$0]  %s293_s1, 64, %s27_s12, [#allocation6]  }
  0x22   :  { %226 = dma.done.wait [#allocation3], 128  }
  0x23   :  { %227 = vsyncadd [#allocation3], 4294967168 }
  0x24   :  { %228 = dma.done.wait [#allocation6], 64  }
  0x25   :  { %229 = vsyncadd [#allocation6], 4294967232  ;;  %v37_v0 = vld [vmem:[#allocation2] sm:$0xff]  ;;  %vm39_vm0 = vcmask 261120   ;;  %v46_v3 = vld [vmem:[#allocation5] sm:$0xf] }
  0x26   :  { %v38_v1 = vmul.f32 %v37_v0, %v37_v0  ;;  %v234_v4 = vmov 0.0   ;;  %v52_v5 = vsel %vm39_vm0, %v46_v3, 0  ;;  %vm235_vm1 = vmmov 0   ;;  %v100_v8 = vld [vmem:[#allocation5] sm:$0xf]  ;;  %s216_s7 = scalar_lea.hbm %s294_s2, 16 }
  0x27   :  { %153 = vmatprep.subr.bf16.mxu0 %v234_v4  ;;  %155 = vmatprep.mubr.msk.bf16.mxu0 %vm235_vm1, %v234_v4  ;;  %v101_v9 = vunpack.c.l.bf16 %v100_v8  ;;  %vm110_vm2 = vcmask 64512   ;;  %vm118_vm3 = vcmask 7168   ;;  %p217_p2 = scmp.ne.s32.totalorder %s294_s2, %s216_s7  ;;  %p220_p3 = scmp.lt.u32.totalorder %s216_s7, %s294_s2 }
  0x28   :  { %v40_v2 = vsel %vm39_vm0, %v38_v1, 0.0  ;;  %154 = vmatpush3.bf16.xpose.msra.mxu0 %v52_v5 }
  0x29   :  { %41 = vadd.xlane.f32.xlu0 %v40_v2  ;;  %p222_p4 = pnand %p220_p3, %p217_p2 }
  0xb6   :  { %v42_v6 = vpop.xlane.xlu0 %41 }
  0xb7   :  { %v43_v7 = vmax.f32 %v42_v6, 1e-24 }
  0xb9   :  { %166 = vrsqrt.f32 %v43_v7 }
  0xc3   :  { %v167_v10 = vpop.eup %166 }
  0xc4   :  { %v45_v11 = vmul.f32 %v167_v10, %v37_v0 }
  0xc6   :  { %v47_v12 = vpack.c.bf16 %v45_v11, %v45_v11  ;;  %v102_v13 = vmul.f32 %v101_v9, %v45_v11 }
  0xc8   :  { %156 = vmatmul.mubr.msk.bf16.vlgmr.msra.gmra.mrb[0].mxu0 %vm39_vm0, %v47_v12  ;;  %v103_v14 = vsel %vm39_vm0, %v102_v13, 0.0 }
  0xc9   :  { %104 = vadd.xlane.f32.xlu1 %v103_v14 }
 0x156   :  { %v105_v26 = vpop.xlane.xlu1 %104 }
 0x157   :  { %v106_v28 = vmul.f32 10.0, %v105_v26 }
 0x19b   :  { %v88_v15 = vpop.f32.mrb[0].mxu0 }
 0x19c   :  { %v94_v16 = vmul.f32 10.0, %v88_v15  ;;  %v157_v17 = vpop.f32.mrb[1].mxu0 }
 0x19d   :  { %v91_v18 = vpop.f32.mrb[2].mxu0 }
 0x19e   :  { %v150_v19 = vadd.f32 -10.0, %v94_v16  ;;  %v158_v20 = vpop.f32.mrb[3].mxu0 }
 0x1a0   :  { %v108_v21 = vmul.f32 1.442695, %v150_v19 }
 0x1a2   :  { %168 = vpow2.f32 %v108_v21 }
 0x1ac   :  { %v169_v22 = vpop.eup %168 }
 0x1ad   :  { %v111_v23 = vsel %vm110_vm2, %v169_v22, 0.0 }
 0x1ae   :  { %112 = vadd.xlane.f32.xlu0 %v111_v23 }
 0x23b   :  { %v113_v24 = vpop.xlane.xlu0 %112 }
 0x23c   :  { %170 = vlog2.f32 %v113_v24 }
 0x246   :  { %v171_v25 = vpop.eup %170 }
 0x247   :  { %v115_v27 = vmul.f32 0.6931472, %v171_v25 }
 0x249   :  { %v116_v29 = vadd.f32 10.0, %v115_v27 }
 0x24b   :  { %v117_v30 = vsub.f32 %v116_v29, %v106_v28 }
 0x24d   :  { %v119_v31 = vsel %vm118_vm3, %v117_v30, 0.0 }
 0x24e   :  { %120 = vadd.xlane.f32.xlu1 %v119_v31 }
 0x2db   :  { %v121_v32 = vpop.xlane.xlu1 %120 }
 0x2dc   :  { %v122_v33 = vrot.slane %v121_v32, 4 }
 0x2de   :  { %v123_v34 = vadd.f32 %v122_v33, %v121_v32 }
 0x2e0   :  { %v124_v35 = vrot.slane %v123_v34, 2 }
 0x2e2   :  { %v125_v36 = vadd.f32 %v124_v35, %v123_v34 }
 0x2e4   :  { %v126_v37 = vrot.slane %v125_v36, 1 }
 0x2e6   :  { %v127_v38 = vadd.f32 %v126_v37, %v125_v36 }
 0x2e8   :  { %159 = vpush %v127_v38 }
 0x319   :  { %s160_s1 = spop %159 }
 0x31a   :  { %s129_s4 = smul.f32 0.025, %s160_s1 }
 0x31c   :  { %131 = sst [smem:[#allocation7]] %s129_s4 }
 0x31d   :  { %225 = shalt.err (!%p222_p4)
}
 0x31e   :  { %s236_s12 = smov [#allocation7]  }
 0x31f   :  { %139 = dma.smem_to_hbm %s236_s12, 16, %s294_s2, [#allocation4]  }
 0x320   :  { %230 = dma.done.wait [#allocation4], 16  }
 0x321   :  { %231 = vsyncadd [#allocation4], 4294967280 }
 0x322   :  { %143 = sfence }
 0x323   :  { %144 = vsyncpa [#allocation3], 1 }
 0x324   :  { %145 = vsyncpa [#allocation6], 1 }
 0x325   :  { %146 = vsyncpa [#allocation4], 1 }

</bundles_post_ra>
